<compile_context>
chip_gen: v7x
topology: tpu7x:2x2x1
jax: 0.10.0
libtpu: 0.0.40
codegen_flags: <defaults>
</compile_context>

<pallas_src>
import jax
import jax.numpy as jnp
from jax.experimental import pallas as pl
from jax.experimental.pallas import tpu as pltpu


def _pad_up(n: int, m: int) -> int:
    return ((n + m - 1) // m) * m


# ----------------------------- Pallas kernel ------------------------------ #
def _make_artnet_kernel(inv_hw: float):
    """Builds the kernel with the static 1/(H*W) mean factor closed over."""

    def kernel(p_ref, w1_ref, w2_ref, b2_ref, out_ref, feat_ref):
        # p_ref   : (Tr, Kp)    bf16 im2col patch tile of image b
        # w1_ref  : (Kp, Cp)    bf16 conv weights (K and Cstem zero-padded)
        # w2_ref  : (Cp, Np)    bf16 head weights (zero-padded)
        # b2_ref  : (1, Np)     f32 head bias (zero-padded)
        # out_ref : (1, 8, Np)  f32 logits tile for image b (row 0 is real)
        # feat_ref: (1, Cp)     f32 pooled-sum accumulator (scratch)
        r = pl.program_id(1)

        @pl.when(r == 0)
        def _():
            feat_ref[...] = jnp.zeros_like(feat_ref)

        # conv3x3 (pad=1) as im2col matmul on this row tile; bf16 in, f32 acc.
        acc = jnp.dot(p_ref[...], w1_ref[...],
                      preferred_element_type=jnp.float32)        # (Tr, Cp)
        acc = jnp.maximum(acc, 0.0)                              # ReLU (VPU)

        # global-average-pool partial sum: f32 cross-sublane reduce (XLU).
        feat_ref[...] += acc.sum(axis=0, keepdims=True)          # (1, Cp)

        @pl.when(r == pl.num_programs(1) - 1)
        def _():
            feat = feat_ref[...] * inv_hw                        # f32 mean
            logits = jnp.dot(feat.astype(jnp.bfloat16), w2_ref[...],
                             preferred_element_type=jnp.float32)  # (1, Np)
            row = logits + b2_ref[...]                           # (1, Np)
            # lane-dense, unmasked full-tile store (broadcast over sublanes).
            out_ref[...] = jnp.broadcast_to(row[:, None, :], out_ref.shape)

    return kernel


# ------------------------------- wrapper ----------------------------------- #
def artnet_forward(x_nchw, w1_hwio, w2, b2, *, tile_rows=128):
    """x_nchw: (B, Cin, H, W) float32 -> logits (B, Ncls)."""
    B, Cin, H, W = x_nchw.shape
    Cstem, Ncls = w2.shape
    HW = H * W
    K = 9 * Cin
    Kp = _pad_up(K, 128)       # lane-dense contraction dim
    Cp = _pad_up(Cstem, 128)   # lane-dense stem channels
    Np = _pad_up(Ncls, 128)    # lane-dense classes

    if HW % tile_rows != 0:
        tile_rows = HW         # toy fallback (assumes HW % 8 == 0)
    n_row_tiles = HW // tile_rows

    # --- plain-JAX layout glue: im2col + zero padding of the small weights ---
    # TODO(synk): for non-toy sizes, do im2col inside the kernel from halo'd
    # NHWC tiles to avoid materializing 9x the input in HBM.
    x_nhwc = jnp.transpose(x_nchw, (0, 2, 3, 1))
    xp = jnp.pad(x_nhwc, ((0, 0), (1, 1), (1, 1), (0, 0)))
    taps = [xp[:, kh:kh + H, kw:kw + W, :]
            for kh in range(3) for kw in range(3)]               # 9x(B,H,W,Cin)
    patches = jnp.concatenate(taps, axis=-1).reshape(B * HW, K)
    patches = jnp.pad(patches, ((0, 0), (0, Kp - K))).astype(jnp.bfloat16)

    w1_flat = w1_hwio.reshape(K, Cstem).astype(jnp.bfloat16)
    w1_pad = jnp.zeros((Kp, Cp), jnp.bfloat16).at[:K, :Cstem].set(w1_flat)
    w2_pad = jnp.zeros((Cp, Np), jnp.bfloat16).at[:Cstem, :Ncls].set(
        w2.astype(jnp.bfloat16))
    b2_pad = jnp.zeros((1, Np), jnp.float32).at[0, :Ncls].set(b2)

    kernel = _make_artnet_kernel(1.0 / HW)

    # VMEM budget: 2x double-buffered patch tile + weights + bias + out tile
    # + scratch, with generous headroom.  32 MiB is <= default scoped VMEM on
    # v6e/v7x and far under every chip's physical VMEM.
    vmem_limit = 32 * 1024 * 1024

    out = pl.pallas_call(
        kernel,
        out_shape=jax.ShapeDtypeStruct((B, 8, Np), jnp.float32),
        grid=(B, n_row_tiles),
        in_specs=[
            # patch rows of image b, row-tile r
            pl.BlockSpec((tile_rows, Kp),
                         lambda b, r: (b * n_row_tiles + r, 0)),
            pl.BlockSpec((Kp, Cp), lambda b, r: (0, 0)),   # conv weights
            pl.BlockSpec((Cp, Np), lambda b, r: (0, 0)),   # head weights
            pl.BlockSpec((1, Np), lambda b, r: (0, 0)),    # head bias
        ],
        out_specs=pl.BlockSpec((1, 8, Np), lambda b, r: (b, 0, 0)),
        scratch_shapes=[pltpu.VMEM((1, Cp), jnp.float32)],
        compiler_params=pltpu.CompilerParams(
            dimension_semantics=("parallel", "arbitrary"),
            vmem_limit_bytes=vmem_limit),
    )(patches, w1_pad, w2_pad, b2_pad)

    return out[:, 0, :Ncls]


# ---------------------------- pure-JAX reference --------------------------- #
def artnet_reference(x_nchw, w1_hwio, w2, b2):
    x_nhwc = jnp.transpose(x_nchw, (0, 2, 3, 1))
    y = jax.lax.conv_general_dilated(
        x_nhwc, w1_hwio, window_strides=(1, 1), padding="SAME",
        dimension_numbers=("NHWC", "HWIO", "NHWC"))
    y = jnp.maximum(y, 0.0)
    feat = jnp.mean(y, axis=(1, 2))                   # (B, Cstem)
    return feat @ w2 + b2[None, :]


# ----------------------------------- main ---------------------------------- #
if __name__ == "__main__":
    B, Cin, H, W = 2, 4, 16, 16
    Cstem, Ncls = 16, 8

    key = jax.random.PRNGKey(0)
    k_x, k_w1, k_w2, k_b2 = jax.random.split(key, 4)

    x = jax.random.normal(k_x, (B, Cin, H, W), dtype=jnp.float32)
    w1 = jax.random.normal(k_w1, (3, 3, Cin, Cstem), dtype=jnp.float32) * 0.1
    w2 = jax.random.normal(k_w2, (Cstem, Ncls), dtype=jnp.float32) * 0.1
    b2 = jax.random.normal(k_b2, (Ncls,), dtype=jnp.float32) * 0.01

    out = artnet_forward(x, w1, w2, b2)
    out = jax.block_until_ready(out)

    ref = artnet_reference(x, w1, w2, b2)
    assert out.shape == (B, Ncls)
    # bf16 matmul inputs (f32 accumulation, f32 pooling) vs. pure-f32 reference.
    assert jnp.allclose(out, ref, rtol=1e-2, atol=1e-2), (out, ref)

    print("KERNEL_OK")
</pallas_src>

<mosaic_0001>
module attributes {stable_mosaic.version = 11 : i64} {
  func.func @kernel(%arg0: i32, %arg1: i32, %arg2: memref<128x128xbf16, #tpu.memory_space<vmem>>, %arg3: memref<128x128xbf16, #tpu.memory_space<vmem>>, %arg4: memref<128x128xbf16, #tpu.memory_space<vmem>>, %arg5: memref<1x128xf32, #tpu.memory_space<vmem>>, %arg6: memref<1x8x128xf32, #tpu.memory_space<vmem>>, %arg7: memref<1x128xf32, #tpu.memory_space<vmem>>) attributes {dimension_semantics = [#tpu.dimension_semantics<parallel>, #tpu.dimension_semantics<arbitrary>], iteration_bounds = array<i64: 2, 2>, scalar_prefetch = 0 : i64, scratch_operands = 1 : i64, tpu.core_type = #tpu.core_type<tc>, window_params = [{transform_indices = @transform_0, window_bounds = array<i64: 128, 128>}, {pipeline_mode = #tpu.pipeline_mode<synchronous>, transform_indices = @transform_1, window_bounds = array<i64: 128, 128>}, {pipeline_mode = #tpu.pipeline_mode<synchronous>, transform_indices = @transform_2, window_bounds = array<i64: 128, 128>}, {pipeline_mode = #tpu.pipeline_mode<synchronous>, transform_indices = @transform_3, window_bounds = array<i64: 1, 128>}, {transform_indices = @transform_4, window_bounds = array<i64: 1, 8, 128>}]} {
    %c0_i32 = arith.constant 0 : i32
    %0 = arith.cmpi eq, %arg1, %c0_i32 : i32
    %1 = arith.extui %0 : i1 to i32
    %c0_i32_0 = arith.constant 0 : i32
    %2 = arith.cmpi ne, %1, %c0_i32_0 : i32
    scf.if %2 {
      %cst_11 = arith.constant 0.000000e+00 : f32
      %16 = vector.broadcast %cst_11 : f32 to vector<1x128xf32>
      %c0_12 = arith.constant 0 : index
      %c0_13 = arith.constant 0 : index
      %17 = vector.load %arg7[%c0_12, %c0_13] : memref<1x128xf32, #tpu.memory_space<vmem>>, vector<1x128xf32>
      tpu.vector_store %arg7[%c0_12, %c0_13], %16 {strides = array<i32>} : memref<1x128xf32, #tpu.memory_space<vmem>>, vector<1x128xf32>,
    } else {
    }
    %c0 = arith.constant 0 : index
    %c0_1 = arith.constant 0 : index
    %3 = vector.load %arg2[%c0, %c0_1] : memref<128x128xbf16, #tpu.memory_space<vmem>>, vector<128x128xbf16>
    %c0_2 = arith.constant 0 : index
    %c0_3 = arith.constant 0 : index
    %4 = vector.load %arg3[%c0_2, %c0_3] : memref<128x128xbf16, #tpu.memory_space<vmem>>, vector<128x128xbf16>
    %cst = arith.constant dense<0.000000e+00> : vector<128x128xf32>
    %5 = tpu.matmul %3, %4, %cst {dimension_numbers = #tpu.dot_dimension_numbers<[1], [0], [0], [1], [0, 0, 1, 1], [], []>} : vector<128x128xbf16>, vector<128x128xbf16>, vector<128x128xf32> -> vector<128x128xf32>
    %cst_4 = arith.constant 0.000000e+00 : f32
    %6 = vector.broadcast %cst_4 : f32 to vector<128x128xf32>
    %7 = arith.maximumf %5, %6 : vector<128x128xf32>
    %c0_5 = arith.constant 0 : index
    %c0_6 = arith.constant 0 : index
    %8 = vector.load %arg7[%c0_5, %c0_6] : memref<1x128xf32, #tpu.memory_space<vmem>>, vector<1x128xf32>
    %cst_7 = arith.constant dense<0.000000e+00> : vector<128xf32>
    %9 = vector.multi_reduction <add>, %7, %cst_7 [0] : vector<128x128xf32> to vector<128xf32>
    %10 = vector.shape_cast %9 : vector<128xf32> to vector<1x128xf32>
    %11 = arith.addf %8, %10 : vector<1x128xf32>
    %c0_8 = arith.constant 0 : index
    %c0_9 = arith.constant 0 : index
    %12 = vector.load %arg7[%c0_8, %c0_9] : memref<1x128xf32, #tpu.memory_space<vmem>>, vector<1x128xf32>
    tpu.vector_store %arg7[%c0_8, %c0_9], %11 {strides = array<i32>} : memref<1x128xf32, #tpu.memory_space<vmem>>, vector<1x128xf32>,
    %c1_i32 = arith.constant 1 : i32
    %13 = arith.cmpi eq, %arg1, %c1_i32 : i32
    %14 = arith.extui %13 : i1 to i32
    %c0_i32_10 = arith.constant 0 : i32
    %15 = arith.cmpi ne, %14, %c0_i32_10 : i32
    scf.if %15 {
      %c0_11 = arith.constant 0 : index
      %c0_12 = arith.constant 0 : index
      %16 = vector.load %arg7[%c0_11, %c0_12] : memref<1x128xf32, #tpu.memory_space<vmem>>, vector<1x128xf32>
      %cst_13 = arith.constant 3.906250e-03 : f32
      %17 = vector.broadcast %cst_13 : f32 to vector<1x128xf32>
      %18 = arith.mulf %16, %17 : vector<1x128xf32>
      %19 = arith.truncf %18 : vector<1x128xf32> to vector<1x128xbf16>
      %c0_14 = arith.constant 0 : index
      %c0_15 = arith.constant 0 : index
      %20 = vector.load %arg4[%c0_14, %c0_15] : memref<128x128xbf16, #tpu.memory_space<vmem>>, vector<128x128xbf16>
      %cst_16 = arith.constant dense<0.000000e+00> : vector<1x128xf32>
      %21 = tpu.matmul %19, %20, %cst_16 {dimension_numbers = #tpu.dot_dimension_numbers<[1], [0], [0], [1], [0, 0, 1, 1], [], []>} : vector<1x128xbf16>, vector<128x128xbf16>, vector<1x128xf32> -> vector<1x128xf32>
      %c0_17 = arith.constant 0 : index
      %c0_18 = arith.constant 0 : index
      %22 = vector.load %arg5[%c0_17, %c0_18] : memref<1x128xf32, #tpu.memory_space<vmem>>, vector<1x128xf32>
      %23 = arith.addf %21, %22 : vector<1x128xf32>
      %24 = vector.shape_cast %23 : vector<1x128xf32> to vector<1x1x128xf32>
      %25 = vector.shape_cast %24 : vector<1x1x128xf32> to vector<1x1x128xf32>
      %26 = vector.broadcast %25 : vector<1x1x128xf32> to vector<1x8x128xf32>
      %c0_19 = arith.constant 0 : index
      %c0_20 = arith.constant 0 : index
      %c0_21 = arith.constant 0 : index
      %27 = vector.load %arg6[%c0_19, %c0_20, %c0_21] : memref<1x8x128xf32, #tpu.memory_space<vmem>>, vector<1x8x128xf32>
      tpu.vector_store %arg6[%c0_19, %c0_20, %c0_21], %26 {strides = array<i32>} : memref<1x8x128xf32, #tpu.memory_space<vmem>>, vector<1x8x128xf32>,
    } else {
    }
    return
  }
  func.func @transform_0(%arg0: i32, %arg1: i32) -> (i32, i32) {
    %c2_i32 = arith.constant 2 : i32
    %0 = arith.muli %arg0, %c2_i32 : i32
    %1 = arith.addi %0, %arg1 : i32
    %c0_i32 = arith.constant 0 : i32
    %c0_i32_0 = arith.constant 0 : i32
    return %1, %c0_i32 : i32, i32
  }
  func.func @transform_1(%arg0: i32, %arg1: i32) -> (i32, i32) {
    %c0_i32 = arith.constant 0 : i32
    %c0_i32_0 = arith.constant 0 : i32
    %c0_i32_1 = arith.constant 0 : i32
    return %c0_i32, %c0_i32_0 : i32, i32
  }
  func.func @transform_2(%arg0: i32, %arg1: i32) -> (i32, i32) {
    %c0_i32 = arith.constant 0 : i32
    %c0_i32_0 = arith.constant 0 : i32
    %c0_i32_1 = arith.constant 0 : i32
    return %c0_i32, %c0_i32_0 : i32, i32
  }
  func.func @transform_3(%arg0: i32, %arg1: i32) -> (i32, i32) {
    %c0_i32 = arith.constant 0 : i32
    %c0_i32_0 = arith.constant 0 : i32
    %c0_i32_1 = arith.constant 0 : i32
    return %c0_i32, %c0_i32_0 : i32, i32
  }
  func.func @transform_4(%arg0: i32, %arg1: i32) -> (i32, i32, i32) {
    %c0_i32 = arith.constant 0 : i32
    %c0_i32_0 = arith.constant 0 : i32
    %c0_i32_1 = arith.constant 0 : i32
    return %arg0, %c0_i32, %c0_i32_0 : i32, i32, i32
  }
}

</mosaic_0001>

<bundles_post_ra>
// kernel: tpu_custom_call.1
= control target key start
LH: loop header
LB: loop body
LE: loop exit
PB: predicated region body
PF: predicated region fallthrough
CT: control target
= control target key end

     0   :  { %s1634_s0 = inlined_call_operand.hbm [shape: bf16[512,128], index: 0, kind: input, shape index: {}]   ;;  %s1635_s1 = inlined_call_operand.hbm [shape: bf16[128,128], index: 1, kind: input, shape index: {}]   ;;  %s1636_s2 = inlined_call_operand.hbm [shape: bf16[128,128], index: 2, kind: input, shape index: {}]   ;;  %s1637_s3 = inlined_call_operand.vmem [shape: f32[1,128], index: 3, kind: input, shape index: {}]   ;;  %s1638_s4 = inlined_call_operand.hbm [shape: f32[2,8,128], index: 4, kind: output, shape index: {}]  }
   0x1   :  { %1653 = sst [smem:[#allocation18_spill]] %s1635_s1 }
   0x2   :  { %1654 = sst [smem:[#allocation19_spill]] %s1636_s2 }
   0x3   :  { %1655 = sst [smem:[#allocation20_spill]] %s1638_s4 }
   0x4   :  { %9 = vsyncpa [#allocation4], 0 }
   0x5   :  { %11 = vsyncpa [#allocation4 + $0x1], 0 }
   0x6   :  { %12 = vsyncpa [#allocation7], 0 }
   0x7   :  { %13 = vsyncpa [#allocation5], 0 }
   0x8   :  { %15 = vsyncpa [#allocation5 + $0x1], 0  ;;  %s1311_s15 = smov 0   ;;  %s1313_s16 = smov 0  }
   0x9   :  { %s1315_s17 = smov 0   ;;  %s1317_s18 = smov 0  }
   0xa   :  { %s1319_s19 = smov 0   ;;  %s1321_s20 = smov 0  }
   0xb   :  { %s1323_s21 = smov 0   ;;  %s1325_s22 = smov 0  }
   0xc   :  { %s1327_s23 = smov 0   ;;  %s1329_s24 = smov 0  }
   0xd   :  { %s1331_s25 = smov 0  }
   0xe LB: > { %1656 = sst [smem:[#allocation13_spill]] %s1235_s15  ;;  %s770_s26 = sadd.s32 4294967295, %s1275_s25   ;;  %s1275_s25 = sphi %s1331_s25, %s21_s25   ;;  %s1271_s24 = sphi %s1329_s24, %s1693_s24   ;;  %s1267_s23 = sphi %s1327_s23, %s1692_s23   ;;  %s1263_s22 = sphi %s1325_s22, %s1691_s22   ;;  %s1259_s21 = sphi %s1323_s21, %s1683_s21   ;;  %s1255_s20 = sphi %s1321_s20, %s1690_s20   ;;  %s1251_s19 = sphi %s1319_s19, %s1689_s19   ;;  %s1247_s18 = sphi %s1317_s18, %s1688_s18   ;;  %s1243_s17 = sphi %s1315_s17, %s1687_s17   ;;  %s1239_s16 = sphi %s1313_s16, %s1686_s16   ;;  %s1235_s15 = sphi %s1311_s15, %s1685_s15  }
   0xf   : > { %1657 = sst [smem:[#allocation14_spill]] %s1267_s23  ;;  %s771_s27 = sadd.s32 4294967294, %s1275_s25  }
  0x10   : > { %p57_p0 = scmp.ne.s32.totalorder %s1251_s19, %s1247_s18  ;;  %p1367_p1 = scmp.eq.s32.totalorder %s770_s26, 0 }
  0x11   : > { %p143_p2 = scmp.ne.s32.totalorder %s1243_s17, %s1239_s16  ;;  %p144_p4 = scmp.eq.s32.totalorder %s770_s26, 3 }
  0x12   : > { %s1658_s28 = scalar_select %p1367_p1, 1, 0 }
  0x13   : > { %p1376_p3 = por %p1367_p1, %p57_p0  ;;  %p149_p5 = scmp.ne.s32.totalorder %s1239_s16, %s1235_s15 }
  0x14   : > { %p150_p6 = scmp.eq.s32.totalorder %s771_s27, 3  ;;  %p1382_p7 = por %p144_p4, %p143_p2 }
  0x15   : > { %s1659_s30 = scalar_select %p1376_p3, 1, 0 }
  0x16   : > { %s1660_s5 = scalar_select %p1382_p7, 1, 0 }
  0x17   : > { %p774_p8 = scmp.ge.s32.totalorder %s1275_s25, 1  ;;  %p1387_p9 = por %p150_p6, %p149_p5 }
  0x18   : > { %1661 = sst [smem:[#allocation15_spill]] %s1660_s5  ;;  %p157_p10 = scmp.lt.s32.totalorder %s1275_s25, 5 }
  0x19   : > { %s1662_s6 = scalar_select %p1387_p9, 1, 0 }
  0x1a   : > { %p1392_p11 = pnand %p774_p8, %p157_p10  ;;  %s1277_s8 = smov [#allocation6]  }
  0x1b   : > { %1663 = sst [smem:[#allocation16_spill]] %s1662_s6  ;;  %s169_s9 = sshll.u32 %s1277_s8, 4  ;;  %s170_s9 = int_to_ptr.vmem [resolvable:$true] %s169_s9 }
  0x1c   : > { %s1664_s7 = scalar_select %p1392_p11, 1, 0 }
  0x1d   : > { %p923_p12 = pneg %p1392_p11  ;;  %s1278_s11 = smov [#allocation8]  }
  0x1e   : > { %s182_s12 = sshll.u32 %s1278_s11, 4  ;;  %s1666_s1 = sld [smem:[#allocation18_spill]]  ;;  %s1404_s12 = int_to_ptr.vmem [resolvable:$true] %s182_s12 }
  0x1f   : > { %p1400_p13 = pnand %p923_p12, %p1367_p1 }
  0x21   : > { %p1065_p2 = pneg %p1400_p13 }
  0x24   : > { %s1063_s18 = scalar_lea.hbm %s1666_s1, 1024 }
  0x25   : > { %p1064_p0 = scmp.ne.s32.totalorder %s1666_s1, %s1063_s18  ;;  %p1070_p6 = scmp.lt.u32.totalorder %s1063_s18, %s1666_s1 }
  0x27   : > { %p1066_p4 = pnand %p1065_p2, %p1064_p0 }
  0x29   : > { %p1067_p5 = pneg %p1066_p4 }
  0x2b   : > { %p1072_p8 = pnand %p1070_p6, %p1067_p5 }
  0x2d   : > { %1075 = shalt.err (!%p1072_p8)
}
  0x2e   : > { %s1076_s11 = scalar_lea.vmem %s170_s9, 1024  ;;  %p1084_p7 = scmp.lt.s32.totalorder %s170_s9, %s170_s9 }
  0x2f   : > { %p1077_p10 = scmp.ne.s32.totalorder %s170_s9, %s1076_s11  ;;  %p1085_p1 = scmp.lt.s32.totalorder %s1076_s11, %s1076_s11 }
  0x31   : > { %p1079_p12 = pnand %p1077_p10, %p1065_p2  ;;  %p1086_p3 = por %p1085_p1, %p1084_p7 }
  0x33   : > { %p1080_p9 = pneg %p1079_p12 }
  0x35   : > { %p1087_p11 = pnand %p1086_p3, %p1080_p9 }
  0x37   : > { %1090 = shalt.err (!%p1087_p11)
}
  0x38   : > { %s1647_s13 = smov 64   ;;  %s1648_s14 = smov 4  }
  0x39   : > { %926 = dma.hbm_to_vmem [thread:$0]  (!%p1400_p13), %s1666_s1, 1024, %s170_s9, [#allocation7], %s1647_s13, %s1647_s13, %s1648_s14  }
  0x3a   : > { %s1667_s2 = sld [smem:[#allocation19_spill]] }
  0x40   : > { %s1091_s8 = scalar_lea.hbm %s1667_s2, 1024 }
  0x41   : > { %p1092_p1 = scmp.ne.s32.totalorder %s1667_s2, %s1091_s8  ;;  %p1098_p9 = scmp.lt.u32.totalorder %s1091_s8, %s1667_s2 }
  0x43   : > { %p1094_p3 = pnand %p1092_p1, %p1065_p2 }
  0x45   : > { %p1095_p7 = pneg %p1094_p3 }
  0x47   : > { %p1100_p11 = pnand %p1098_p9, %p1095_p7 }
  0x49   : > { %1103 = shalt.err (!%p1100_p11)
}
  0x4a   : > { %s1104_s9 = scalar_lea.vmem %s1404_s12, 1024  ;;  %p1112_p6 = scmp.lt.s32.totalorder %s1404_s12, %s1404_s12 }
  0x4b   : > { %p1105_p0 = scmp.ne.s32.totalorder %s1404_s12, %s1104_s9  ;;  %p1113_p8 = scmp.lt.s32.totalorder %s1104_s9, %s1104_s9 }
  0x4d   : > { %p1107_p4 = pnand %p1105_p0, %p1065_p2  ;;  %p1114_p10 = por %p1113_p8, %p1112_p6 }
  0x4f   : > { %p1108_p5 = pneg %p1107_p4 }
  0x51   : > { %p1115_p12 = pnand %p1114_p10, %p1108_p5 }
  0x53   : > { %1118 = shalt.err (!%p1115_p12)
}
  0x54   : > { %929 = dma.hbm_to_vmem [thread:$0]  (!%p1400_p13), %s1667_s2, 1024, %s1404_s12, [#allocation7], %s1647_s13, %s1647_s13, %s1648_s14  }
  0x55   : > { %s30_s6 = sadd.s32 1, %s1267_s23  ;;  %s33_s10 = sadd.s32 1, %s1271_s24 }
  0x56   : > { %p31_p2 = scmp.ge.s32.totalorder %s30_s6, 2  ;;  %s772_s29 = sshll.u32 %s1271_s24, 1 }
  0x57   : > { %s38_s18 = sadd.s32 %s1267_s23, %s772_s29  ;;  %s44_s26 = sadd.s32 1, %s1255_s20 }
  0x58   : > { %s1695_s6 = smov (%p31_p2, %s30_s6), 0  ;;  %s1697_s10 = smov (!%p31_p2, %s33_s10), %s1271_s24 }
  0x59   : > { %p51_p1 = scmp.ne.s32.totalorder %s1255_s20, %s1251_s19  ;;  %p52_p3 = scmp.eq.s32.totalorder %s1275_s25, 0 }
  0x5a   : > { %p35_p7 = scmp.ge.s32.totalorder %s1697_s10, 2  ;;  %p940_p9 = scmp.lt.s32.totalorder %s1275_s25, 4 }
  0x5b   : > { %p1471_p11 = por %p52_p3, %p51_p1  ;;  %s199_s27 = sand.u32 1, %s1255_s20  }
  0x5c   : > { %s1699_s10 = smov (%p35_p7, %s1697_s10), 0  ;;  %s778_s8 = sshll.u32 %s199_s27, 6 }
  0x5d   : > { %1669 = sst [smem:[#allocation17_spill]] %s1699_s10  ;;  %s773_s11 = sshll.u32 %s1699_s10, 1 }
  0x5e   : > { %s130_s9 = ssub.s32 %s1271_s24, %s1699_s10  ;;  %s40_s4 = sadd.s32 %s773_s11, %s1695_s6 }
  0x5f   : > { %p131_p13 = scmp.eq.s32.totalorder %s130_s9, 0  ;;  %s41_s15 = ssub.s32 %s38_s18, %s40_s4 }
  0x60   : > { %p42_p0 = scmp.eq.s32.totalorder %s41_s15, 0  ;;  %s817_s29 = sshll.u32 %s38_s18, 10 }
  0x61   : > { %s1670_s13 = sadd.s32 1, %s1243_s17  ;;  %s1493_s5 = scalar_lea.hbm %s1634_s0, %s817_s29 }
  0x62   : > { %s1485_s14 = scalar_select %p131_p13, %s1243_s17, %s1670_s13  }
  0x63   : > { %s1488_s1 = scalar_select %p42_p0, %s1255_s20, %s44_s26  }
  0x64   : > { %s203_s10 = scalar_lea.vmem [#allocation3], %s778_s8  ;;  %p1501_p4 = pnand %p940_p9, %p1471_p11 }
  0x65   : > { %s212_s11 = sshll.u32 %s203_s10, 4  ;;  %s1505_s18 = scalar_lea.sflag [#allocation4], %s199_s27  ;;  %s1495_s11 = int_to_ptr.vmem [resolvable:$true] %s212_s11 }
  0x66   : > { %s1119_s2 = scalar_lea.hbm %s1493_s5, 1024  ;;  %p1121_p6 = pneg %p1501_p4 }
  0x67   : > { %p1120_p5 = scmp.ne.s32.totalorder %s1493_s5, %s1119_s2  ;;  %s1124_s26 = scalar_lea.hbm %s1634_s0, 4096 }
  0x68   : > { %p1125_p12 = scmp.lt.u32.totalorder %s1493_s5, %s1634_s0  ;;  %p1126_p2 = scmp.lt.u32.totalorder %s1124_s26, %s1119_s2 }
  0x69   : > { %p1122_p8 = pnand %p1121_p6, %p1120_p5  ;;  %p1128_p3 = scmp.lt.u32.totalorder %s1119_s2, %s1493_s5 }
  0x6a   : > { %p1127_p1 = por %p1126_p2, %p1125_p12 }
  0x6b   : > { %p1123_p10 = pneg %p1122_p8 }
  0x6c   : > { %p1129_p7 = por %p1128_p3, %p1127_p1 }
  0x6e   : > { %p1130_p9 = pnand %p1129_p7, %p1123_p10 }
  0x70   : > { %1133 = shalt.err (!%p1130_p9)
}
  0x71   : > { %s1134_s27 = scalar_lea.vmem %s1495_s11, 1024  ;;  %s1281_s9 = smov [#allocation3]  }
  0x72   : > { %p1135_p11 = scmp.ne.s32.totalorder %s1495_s11, %s1134_s27  ;;  %s1139_s4 = sshll.u32 %s1281_s9, 4  ;;  %s1140_s4 = int_to_ptr.vmem [resolvable:$false] %s1139_s4 }
  0x73   : > { %s1141_s15 = scalar_lea.vmem %s1140_s4, 2048  ;;  %p1142_p5 = scmp.lt.s32.totalorder %s1495_s11, %s1140_s4 }
  0x74   : > { %p1137_p13 = pnand %p1135_p11, %p1121_p6  ;;  %p1143_p8 = scmp.lt.s32.totalorder %s1141_s15, %s1134_s27 }
  0x76   : > { %p1138_p0 = pneg %p1137_p13  ;;  %p1144_p12 = por %p1143_p8, %p1142_p5 }
  0x78   : > { %p1145_p2 = pnand %p1144_p12, %p1138_p0 }
  0x7a   : > { %1148 = shalt.err (!%p1145_p2)
}
  0x7b   : > { %s1672_s29 = smov 4   ;;  %s1673_s2 = smov 64  }
  0x7c   : > { %933 = dma.hbm_to_vmem [thread:$0]  (!%p1501_p4), %s1493_s5, 1024, %s1495_s11, %s1505_s18, %s1673_s2, %s1673_s2, %s1672_s29  }
  0x7d   : > { %p1674_p6 = scmp.ne.s32.totalorder %s1664_s7, 0 }
  0x7e   : > { %s226_s23 = sand.u32 (!%p1674_p6), 1, %s1251_s19   ;;  %p1675_p10 = scmp.ne.s32.totalorder (!%p1674_p6), %s1659_s30, 0 }
  0x7f   : > { %224 = sbr.rel (%p1674_p6) target bundleno = 697 (0x2b9), region = 36  ;;  %s783_s10 = sshll.u32 (!%p1674_p6), %s226_s23, 6 }
  0x80   : > { %s227_s26 = scalar_lea.sflag (!%p1674_p6), [#allocation4], %s226_s23  ;;  %s1539_s12 = scalar_lea.vmem (!%p1674_p6), [#allocation3], %s783_s10 }
  0x86   : > { %1222 = dma.done.wait (%p1675_p10), %s227_s26, 1024  }
  0x87   : > { %1224 = vsyncadd (%p1675_p10), %s227_s26, 4294966272  ;;  %p1676_p1 = scmp.ne.s32.totalorder %s1658_s28, 0 }
  0x89   : > { %1226 = dma.done.wait (%p1676_p1), [#allocation7], 2048  }
  0x8a   : > { %1228 = vsyncadd (%p1676_p1), [#allocation7], 4294965248  ;;  %s260_s5 = sand.u32 1, %s1239_s16   ;;  %p787_p4 = scmp.ne.s32.totalorder %s1259_s21, 0 }
  0x8b   : > { %s1552_s7 = sshll.u32 %s260_s5, 3  ;;  %v1282_v0 = vmov (!%p787_p4), 0.0  }
  0x8c   : > { %s262_s11 = scalar_lea.vmem [#allocation9], %s1552_s7  ;;  %270 = sbr.rel (%p787_p4) target bundleno = 147 (0x93), region = 52  ;;  %271 = vst [vmem:[#allocation2] sm:$0x1] (!%p787_p4), %v1282_v0 }
  0x93 PF: > { %v1039_v1 = vld [vmem:[#allocation6] sm:$0xff]   ;;  %v1040_v2 = vld [vmem:[#allocation6 + $0x8] sm:$0xff]   ;;  %v1041_v3 = vld [vmem:[#allocation6 + $0x10] sm:$0xff]   ;;  %p804_p3 = scmp.ne.s32.totalorder %s1259_s21, 1 }
  0x94   : > { %843 = vmatprep.subr.bf16.mxu0 %v1039_v1  ;;  %895 = vmatprep.subr.bf16.mxu1 %v1039_v1  ;;  %v1042_v4 = vld [vmem:[#allocation6 + $0x18] sm:$0xff]   ;;  %v1047_v5 = vld [vmem:[%s1539_s12] sm:$0xff]   ;;  %v1044_v8 = vld [vmem:[#allocation6 + $0x28] sm:$0xff]   ;;  %vm1284_vm0 = vmmov (!%p804_p3), 0  }
  0x95   : > { %844 = vmatpush3.bf16.msra.mxu0 %v1039_v1  ;;  %903 = vmatpush3.bf16.msra.mxu1 %v1039_v1  ;;  %v1043_v6 = vld [vmem:[#allocation6 + $0x20] sm:$0xff]   ;;  %v1045_v9 = vld [vmem:[#allocation6 + $0x30] sm:$0xff]   ;;  %v1046_v10 = vld [vmem:[#allocation6 + $0x38] sm:$0xff]  }
  0x96   : > { %845 = vmatprep.subr.bf16.mxu0 %v1040_v2  ;;  %896 = vmatprep.subr.bf16.mxu1 %v1040_v2  ;;  %v1051_v7 = vld [vmem:[%s1539_s12 + $0x20] sm:$0xff]   ;;  %v1048_v11 = vld [vmem:[%s1539_s12 + $0x8] sm:$0xff]   ;;  %v1049_v13 = vld [vmem:[%s1539_s12 + $0x10] sm:$0xff]  }
  0x97   : > { %859 = vmatprep.mubr.bf16.mxu0 %v1047_v5  ;;  %867 = vmatprep.mubr.bf16.mxu1 %v1051_v7  ;;  %v1052_v12 = vld [vmem:[%s1539_s12 + $0x28] sm:$0xff]   ;;  %v1053_v14 = vld [vmem:[%s1539_s12 + $0x30] sm:$0xff]   ;;  %v1050_v15 = vld [vmem:[%s1539_s12 + $0x18] sm:$0xff]  }
  0x98   : > { %v1054_v16 = vld [vmem:[%s1539_s12 + $0x38] sm:$0xff]  }
  0x99   : > { %846 = vmatpush3.bf16.msra.mxu0 %v1040_v2  ;;  %904 = vmatpush3.bf16.msra.mxu1 %v1040_v2  ;;  %v513_v5 = vld [vmem:[#allocation2] sm:$0x1] }
  0x9a   : > { %847 = vmatprep.subr.bf16.mxu0 %v1041_v3  ;;  %897 = vmatprep.subr.bf16.mxu1 %v1041_v3 }
  0x9d   : > { %848 = vmatpush3.bf16.msra.mxu0 %v1041_v3  ;;  %905 = vmatpush3.bf16.msra.mxu1 %v1041_v3 }
  0x9e   : > { %849 = vmatprep.subr.bf16.mxu0 %v1042_v4  ;;  %898 = vmatprep.subr.bf16.mxu1 %v1042_v4 }
  0xa1   : > { %850 = vmatpush3.bf16.msra.mxu0 %v1042_v4  ;;  %906 = vmatpush3.bf16.msra.mxu1 %v1042_v4 }
  0xa2   : > { %851 = vmatprep.subr.bf16.mxu0 %v1043_v6  ;;  %899 = vmatprep.subr.bf16.mxu1 %v1043_v6 }
  0xa5   : > { %852 = vmatpush3.bf16.msra.mxu0 %v1043_v6  ;;  %907 = vmatpush3.bf16.msra.mxu1 %v1043_v6 }
  0xa6   : > { %853 = vmatprep.subr.bf16.mxu0 %v1044_v8  ;;  %900 = vmatprep.subr.bf16.mxu1 %v1044_v8 }
  0xa9   : > { %854 = vmatpush3.bf16.msra.mxu0 %v1044_v8  ;;  %908 = vmatpush3.bf16.msra.mxu1 %v1044_v8  ;;  %v1055_v8 = vld [vmem:[#allocation8] sm:$0xff] (!%p804_p3)  }
  0xaa   : > { %855 = vmatprep.subr.bf16.mxu0 %v1045_v9  ;;  %901 = vmatprep.subr.bf16.mxu1 %v1045_v9 }
  0xad   : > { %856 = vmatpush3.bf16.msra.mxu0 %v1045_v9  ;;  %909 = vmatpush3.bf16.msra.mxu1 %v1045_v9  ;;  %v1283_v9 = vmov (!%p804_p3), 0.0  }
  0xae   : > { %857 = vmatprep.subr.bf16.mxu0 %v1046_v10  ;;  %902 = vmatprep.subr.bf16.mxu1 %v1046_v10 }
  0xb1   : > { %858 = vmatpush3.bf16.msra.mxu0 %v1046_v10  ;;  %910 = vmatpush3.bf16.msra.mxu1 %v1046_v10  ;;  %v1056_v10 = vld [vmem:[#allocation8 + $0x8] sm:$0xff] (!%p804_p3)  }
  0xb2   : > { %875 = vmatprep.subr.bf16.mxu0 (!%p804_p3), %v1283_v9 }
  0xb4   : > { %860 = vmatmul.mubr.bf16.vlgmr.msra.gmra.mrb[0].mxu0 %v1048_v11  ;;  %868 = vmatmul.mubr.bf16.vlgmr.msra.gmra.mrb[0].mxu1 %v1052_v12  ;;  %v1057_v11 = vld [vmem:[#allocation8 + $0x10] sm:$0xff] (!%p804_p3)   ;;  %v1058_v12 = vld [vmem:[#allocation8 + $0x18] sm:$0xff] (!%p804_p3)  }
  0xb5   : > { %863 = vmatprep.mubr.bf16.mxu0 %v1049_v13  ;;  %871 = vmatprep.mubr.bf16.mxu1 %v1053_v14  ;;  %v1059_v13 = vld [vmem:[#allocation8 + $0x20] sm:$0xff] (!%p804_p3)   ;;  %v1060_v14 = vld [vmem:[#allocation8 + $0x28] sm:$0xff] (!%p804_p3)  }
  0xb6   : > { %876 = vmatpush3.bf16.msra.mxu0 (!%p804_p3), %v1055_v8 }
  0xb7   : > { %877 = vmatprep.subr.bf16.mxu0 (!%p804_p3), %v1283_v9 }
  0xba   : > { %878 = vmatpush3.bf16.msra.mxu0 (!%p804_p3), %v1056_v10 }
  0xbb   : > { %879 = vmatprep.subr.bf16.mxu0 (!%p804_p3), %v1283_v9 }
  0xbc   : > { %864 = vmatmul.mubr.bf16.gmra.mrb[4].mxu0 %v1050_v15  ;;  %872 = vmatmul.mubr.bf16.gmra.mrb[4].mxu1 %v1054_v16  ;;  %v1061_v15 = vld [vmem:[#allocation8 + $0x30] sm:$0xff] (!%p804_p3)  }
  0xbd   : > { %891 = vmatprep.mubr.msk.bf16.mxu0 (!%p804_p3), %vm1284_vm0, %v1283_v9 }
  0xbe   : > { %880 = vmatpush3.bf16.msra.mxu0 (!%p804_p3), %v1057_v11 }
  0xbf   : > { %881 = vmatprep.subr.bf16.mxu0 (!%p804_p3), %v1283_v9 }
  0xc2   : > { %882 = vmatpush3.bf16.msra.mxu0 (!%p804_p3), %v1058_v12 }
  0xc3   : > { %883 = vmatprep.subr.bf16.mxu0 (!%p804_p3), %v1283_v9 }
  0xc6   : > { %884 = vmatpush3.bf16.msra.mxu0 (!%p804_p3), %v1059_v13 }
  0xc7   : > { %885 = vmatprep.subr.bf16.mxu0 (!%p804_p3), %v1283_v9 }
  0xca   : > { %886 = vmatpush3.bf16.msra.mxu0 (!%p804_p3), %v1060_v14 }
  0xcb   : > { %887 = vmatprep.subr.bf16.mxu0 (!%p804_p3), %v1283_v9 }
  0xce   : > { %888 = vmatpush3.bf16.msra.mxu0 (!%p804_p3), %v1061_v15 }
  0xcf   : > { %889 = vmatprep.subr.bf16.mxu0 (!%p804_p3), %v1283_v9 }
 0x187   : > { %v861_v17 = vpop.f32.mrb[0].mxu0  ;;  %v869_v18 = vpop.f32.mrb[0].mxu1 }
 0x188   : > { %v434_v19 = vpop.f32.mrb[1].mxu0  ;;  %v466_v20 = vpop.f32.mrb[1].mxu1  ;;  %v499_v27 = vmax.f32 %v861_v17, 0.0  ;;  %v507_v51 = vmax.f32 %v869_v18, 0.0  ;;  %v1062_v18 = vld [vmem:[#allocation8 + $0x38] sm:$0xff] (!%p804_p3)  }
 0x189   : > { %v862_v21 = vpop.f32.mrb[2].mxu0  ;;  %v870_v22 = vpop.f32.mrb[2].mxu1  ;;  %v497_v25 = vmax.f32 %v434_v19, 0.0  ;;  %v505_v47 = vmax.f32 %v466_v20, 0.0  ;;  %890 = vmatpush3.bf16.msra.mxu0 (!%p804_p3), %v1062_v18  ;;  %v649_v20 = vlaneseq (!%p804_p3) }
 0x18a   : > { %v437_v23 = vpop.f32.mrb[3].mxu0  ;;  %v469_v24 = vpop.f32.mrb[3].mxu1  ;;  %v500_v29 = vmax.f32 %v862_v21, 0.0  ;;  %v508_v53 = vmax.f32 %v870_v22, 0.0  ;;  %v560_v22 = vld [vmem:[%s1637_s3] sm:$0x1] (!%p804_p3) }
 0x18b   : > { %v498_v26 = vmax.f32 %v437_v23, 0.0  ;;  %v506_v50 = vmax.f32 %v469_v24, 0.0  ;;  %v650_v21 = vshrl.u32 (!%p804_p3), %v649_v20, 7 }
 0x18d   : > { %v514_v28 = vadd.f32 %v498_v26, %v497_v25  ;;  %v651_v23 = vsub.s32 (!%p804_p3), 0, %v650_v21 }
 0x18f   : > { %v515_v30 = vadd.f32 %v514_v28, %v499_v27  ;;  %v865_v31 = vpop.f32.mrb[4].mxu0  ;;  %v873_v32 = vpop.f32.mrb[4].mxu1 }
 0x190   : > { %v450_v33 = vpop.f32.mrb[5].mxu0  ;;  %v482_v34 = vpop.f32.mrb[5].mxu1  ;;  %v503_v43 = vmax.f32 %v865_v31, 0.0  ;;  %v511_v59 = vmax.f32 %v873_v32, 0.0 }
 0x191   : > { %v501_v35 = vmax.f32 %v450_v33, 0.0  ;;  %v516_v36 = vadd.f32 %v515_v30, %v500_v29  ;;  %v866_v37 = vpop.f32.mrb[6].mxu0  ;;  %v874_v38 = vpop.f32.mrb[6].mxu1  ;;  %v509_v55 = vmax.f32 %v482_v34, 0.0 }
 0x192   : > { %v453_v39 = vpop.f32.mrb[7].mxu0  ;;  %v485_v40 = vpop.f32.mrb[7].mxu1  ;;  %v504_v45 = vmax.f32 %v866_v37, 0.0  ;;  %v512_v61 = vmax.f32 %v874_v38, 0.0 }
 0x193   : > { %v517_v41 = vadd.f32 %v516_v36, %v501_v35  ;;  %v502_v42 = vmax.f32 %v453_v39, 0.0  ;;  %v510_v58 = vmax.f32 %v485_v40, 0.0 }
 0x195   : > { %v518_v44 = vadd.f32 %v517_v41, %v502_v42 }
 0x197   : > { %v519_v46 = vadd.f32 %v518_v44, %v503_v43 }
 0x199   : > { %v520_v48 = vadd.f32 %v519_v46, %v504_v45 }
 0x19b   : > { %v521_v49 = vadd.f32 %v520_v48, %v505_v47 }
 0x19d   : > { %v522_v52 = vadd.f32 %v521_v49, %v506_v50 }
 0x19f   : > { %v523_v54 = vadd.f32 %v522_v52, %v507_v51 }
 0x1a1   : > { %v524_v56 = vadd.f32 %v523_v54, %v508_v53 }
 0x1a3   : > { %v525_v57 = vadd.f32 %v524_v56, %v509_v55 }
 0x1a5   : > { %v526_v60 = vadd.f32 %v525_v57, %v510_v58 }
 0x1a7   : > { %v527_v62 = vadd.f32 %v526_v60, %v511_v59 }
 0x1a9   : > { %v528_v63 = vadd.f32 %v527_v62, %v512_v61 }
 0x1ab   : > { %v529_v0 = vrot.slane %v528_v63, 4 }
 0x1ad   : > { %v530_v1 = vadd.f32 %v529_v0, %v528_v63 }
 0x1af   : > { %v531_v2 = vrot.slane %v530_v1, 2 }
 0x1b1   : > { %v532_v3 = vadd.f32 %v531_v2, %v530_v1 }
 0x1b3   : > { %v533_v4 = vrot.slane %v532_v3, 1  ;;  %540 = sbr.rel (%p804_p3) target bundleno = 670 (0x29e), region = 56 }
 0x1b5   : > { %v534_v6 = vadd.f32 %v533_v4, %v532_v3 }
 0x1b7   : > { %v535_v7 = vadd.f32 %v534_v6, %v513_v5 }
 0x1b9   : > { %536 = vst [vmem:[#allocation2] sm:$0x1] %v535_v7 }
 0x1c0   : > { %v541_v16 = vld [vmem:[#allocation2] sm:$0x1] }
 0x1c1   : > { %v542_v17 = vmul.f32 0.00390625, %v541_v16 }
 0x1c3   : > { %v543_v19 = vpack.c.bf16 %v542_v17, %v542_v17 }
 0x1c5   : > { %892 = vmatmul.mubr.bf16.vlgmr.msra.gmra.mrb[0].mxu0 %v543_v19 }
 0x298   : > { %v643_v24 = vpop.f32.mrb[0].mxu0 }
 0x299   : > { %v644_v25 = vadd.f32 %v643_v24, %v560_v22  ;;  %v893_v26 = vpop.f32.mrb[1].mxu0 }
 0x29a   : > { %v646_v27 = vpop.f32.mrb[2].mxu0 }
 0x29b   : > { %v652_v28 = vrot.slane %v644_v25, %v651_v23  ;;  %v894_v29 = vpop.f32.mrb[3].mxu0 }
 0x29d   : > { %653 = vst [vmem:[%s262_s11] sm:$0xff] %v652_v28 }
 0x29e PF: > { %s1677_s30 = sld [smem:[#allocation15_spill]]  ;;  %s814_s13 = sshll.u32 %s1263_s22, 7 }
 0x29f   : > { %s1678_s27 = sld [smem:[#allocation20_spill]]  ;;  %s668_s4 = sshll.u32 %s262_s11, 4  ;;  %s669_s4 = int_to_ptr.vmem [resolvable:$true] %s668_s4 }
 0x2a0   : > { %s655_s15 = scalar_lea.sflag [#allocation5], %s260_s5  ;;  %s1149_s29 = scalar_lea.vmem %s669_s4, 128 }
 0x2a1   : > { %p1150_p7 = scmp.ne.s32.totalorder %s669_s4, %s1149_s29  ;;  %s1285_s2 = smov [#allocation9]  }
 0x2a2   : > { %s1153_s23 = sshll.u32 %s1285_s2, 4  ;;  %s1154_s23 = int_to_ptr.vmem [resolvable:$false] %s1153_s23 }
 0x2a3   : > { %s1155_s10 = scalar_lea.vmem %s1154_s23, 256  ;;  %p1156_p0 = scmp.lt.s32.totalorder %s669_s4, %s1154_s23 }
 0x2a4   : > { %p1679_p9 = scmp.ne.s32.totalorder %s1677_s30, 0  ;;  %p1157_p5 = scmp.lt.s32.totalorder %s1155_s10, %s1149_s29 }
 0x2a5   : > { %s1574_s9 = scalar_lea.hbm %s1678_s27, %s814_s13 }
 0x2a6   : > { %p1151_p11 = pnand %p1150_p7, %p1679_p9  ;;  %p1158_p8 = por %p1157_p5, %p1156_p0 }
 0x2a8   : > { %p1152_p13 = pneg %p1151_p11 }
 0x2aa   : > { %p1159_p12 = pnand %p1158_p8, %p1152_p13 }
 0x2ac   : > { %1162 = shalt.err (!%p1159_p12)
}
 0x2ad   : > { %s1163_s22 = scalar_lea.hbm %s1574_s9, 128  ;;  %s1167_s5 = scalar_lea.hbm %s1678_s27, 256 }
 0x2ae   : > { %p1164_p2 = scmp.ne.s32.totalorder %s1574_s9, %s1163_s22  ;;  %p1168_p1 = scmp.lt.u32.totalorder %s1574_s9, %s1678_s27 }
 0x2af   : > { %p1169_p4 = scmp.lt.u32.totalorder %s1167_s5, %s1163_s22  ;;  %p1171_p7 = scmp.lt.u32.totalorder %s1163_s22, %s1574_s9 }
 0x2b0   : > { %p1165_p6 = pnand %p1164_p2, %p1679_p9 }
 0x2b1   : > { %p1170_p3 = por %p1169_p4, %p1168_p1 }
 0x2b2   : > { %p1166_p10 = pneg %p1165_p6 }
 0x2b3   : > { %p1172_p11 = por %p1171_p7, %p1170_p3 }
 0x2b5   : > { %p1173_p13 = pnand %p1172_p11, %p1166_p10 }
 0x2b7   : > { %1176 = shalt.err (!%p1173_p13)
}
 0x2b8   : > { %921 = dma.vmem_to_hbm [thread:$0]  (%p1679_p9), %s669_s4, 128, %s1574_s9, %s655_s15  }
 0x2b9 PF: > { %s1680_s21 = sld [smem:[#allocation13_spill]]  ;;  %s1681_s28 = sld [smem:[#allocation16_spill]] }
 0x2ba   : > { %p943_p0 = scmp.ge.s32.totalorder %s1275_s25, 2 }
 0x2bf   : > { %s680_s13 = sand.u32 1, %s1680_s21   ;;  %p1682_p5 = scmp.ne.s32.totalorder %s1681_s28, 0 }
 0x2c0   : > { %s681_s18 = scalar_lea.sflag [#allocation5], %s680_s13 }
 0x2c1   : > { %p935_p8 = pnand %p943_p0, %p1682_p5 }
 0x2c3   : > { %1230 = dma.done.wait (!%p935_p8), %s681_s18, 128  }
 0x2c4   : > { %1232 = vsyncadd (!%p935_p8), %s681_s18, 4294967168  ;;  %s21_s25 = sadd.s32 1, %s1275_s25   ;;  %s1683_s21 = sld [smem:[#allocation14_spill]] }
 0x2c5   : > { %p18_p12 = scmp.ge.s32.totalorder %s21_s25, 6   ;;  %s1684_s30 = sld [smem:[#allocation17_spill]] }
 0x2c6   : > { %s1685_s15 = smov %s1239_s16  ;;  %s1686_s16 = smov %s1243_s17 }
 0x2c7   : > { %s1687_s17 = smov %s1485_s14  ;;  %s1688_s18 = smov %s1251_s19 }
 0x2c8   : > { %s1689_s19 = smov %s1255_s20  ;;  %s1690_s20 = smov %s1488_s1 }
 0x2c9   : > { %s1691_s22 = smov %s1271_s24  ;;  %s1692_s23 = smov %s1695_s6 }
 0x2ca   :  { %20 = sbr.rel (!%p18_p12) target bundleno = 14 (0xe), region = 97 }
 0x2cb   : > { %s1693_s24 = smov %s1684_s30 }
 0x2d1   :  { %686 = vsyncpa [#allocation4], 1 }
 0x2d2   :  { %688 = vsyncpa [#allocation4 + $0x1], 1 }
 0x2d3   :  { %689 = vsyncpa [#allocation7], 1 }
 0x2d4   :  { %690 = vsyncpa [#allocation5], 1 }
 0x2d5   :  { %692 = vsyncpa [#allocation5 + $0x1], 1 }

</bundles_post_ra>
